<compile_context>
chip_gen: v7x
topology: tpu7x:2x2x1
jax: 0.10.0
libtpu: 0.0.40
codegen_flags: <defaults>
</compile_context>

<pallas_src>
import jax
import jax.numpy as jnp
from jax.experimental import pallas as pl
from jax.experimental.pallas import tpu as pltpu


# ----------------------------------------------------------------------------- kernel ---
def _make_layernorm_first_kernel(eps: float):
    def kernel(x_ref, scale_ref, bias_ref, o_ref):
        # x_ref: (Nb, C, T); scale_ref / bias_ref: (1, C, T) float32 (lane-dense).
        x = x_ref[...].astype(jnp.float32)
        mu = jnp.mean(x, axis=1, keepdims=True)            # (Nb, 1, T) sublane reduce (XLU)
        xc = x - mu
        var = jnp.mean(xc * xc, axis=1, keepdims=True)     # two-pass variance (no clamp)
        inv_std = jax.lax.rsqrt(var + eps)                 # EUP rsqrt (free slot)
        o_ref[...] = (scale_ref[...] * (xc * inv_std) + bias_ref[...]).astype(o_ref.dtype)

    return kernel


# ------------------------------------------------------------------------- tiling utils --
def _round_up(x: int, m: int) -> int:
    return -(-x // m) * m


def _cdiv(a: int, b: int) -> int:
    return -(-a // b)


def _divisors(n: int):
    return [d for d in range(1, n + 1) if n % d == 0]


def _vmem_capacity_bytes() -> int:
    try:
        cap = int(pltpu.get_tpu_info().vmem_capacity_bytes)
        if cap > 0:
            return cap
    except Exception:
        pass
    return 64 * 1024 * 1024  # conservative fallback (v7x per-TensorCore VMEM)


def _block_footprint_bytes(nb: int, C: int, t: int, itemsize: int) -> int:
    """Estimated VMEM footprint of one grid step (double-buffered in/out + f32 temps)."""
    sub_in = max((8 * 4) // itemsize, 8)       # sublane packing: f32 -> 8, bf16 -> 16
    cp_in = _round_up(C, sub_in)
    cp_f32 = _round_up(C, 8)
    in_blk = nb * cp_in * t * itemsize         # one input buffer
    out_blk = in_blk                           # output dtype == input dtype
    f32_tmp = 3 * nb * cp_f32 * t * 4          # f32 copy, centered x, pre-downcast result
    params = 2 * 2 * cp_f32 * t * 4            # scale + bias blocks, double-buffered
    return 2 * in_blk + 2 * out_blk + f32_tmp + params


def _choose_tiles(N, C, HW, itemsize, vmem_limit, max_in_block):
    """Pick (T, Nb): lane tile (multiple of 128) and batch fold (divisor of N)."""
    budget = int(0.8 * vmem_limit)
    HW128 = _round_up(HW, 128)
    sub_in = max((8 * 4) // itemsize, 8)
    cp_in = _round_up(C, sub_in)
    cp_f32 = _round_up(C, 8)

    def in_block_bytes(nb, t):
        return nb * cp_in * t * itemsize

    def fits(nb, t):
        return (in_block_bytes(nb, t) <= max_in_block
                and _block_footprint_bytes(nb, C, t, itemsize) <= budget)

    # 1) Largest lane tile (Nb = 1) under both the input-block cap and the footprint budget.
    per_lane = 4 * cp_in * itemsize + 12 * cp_f32 + 16 * cp_f32
    t_max = min(budget // per_lane, max_in_block // (cp_in * itemsize))
    T = max(128, min(HW128, (t_max // 128) * 128))

    # 2) Fold batch rows into the block to amortize the ~0.35 us per-grid-step overhead.
    Nb = 1
    for nb in sorted(_divisors(N), reverse=True):
        if fits(nb, T):
            Nb = nb
            break

    # 3) Megacore: prefer an EVEN total number of parallel grid steps so both TensorCores
    #    stream DMAs; split the spatial axis / unfold the batch rather than shrinking
    #    blocks below a useful size.
    def n_steps(nb, t):
        return (N // nb) * _cdiv(HW, t)

    if n_steps(Nb, T) % 2 == 1:
        if n_steps(Nb, T) < 2:
            floor = 0                                            # no parallelism at all
        else:
            floor = min(2 * 1024 * 1024, in_block_bytes(Nb, T) // 2)
        cur_k = _cdiv(HW, T)
        t_cands = {T}
        for k in range(cur_k, cur_k + 9):                        # up to 8 extra spatial splits
            if k <= 0:
                continue
            t_cands.add(max(128, min(HW128, _round_up(_cdiv(HW, k), 128))))
        best = None
        for nb in [d for d in _divisors(N) if d <= Nb]:
            for t in sorted(t_cands, reverse=True):
                if not fits(nb, t):
                    continue
                if n_steps(nb, t) % 2 != 0:
                    continue
                ib = in_block_bytes(nb, t)
                if ib < floor:
                    continue
                if best is None or ib > best[0]:
                    best = (ib, nb, t)
        if best is not None:
            _, Nb, T = best

    return T, Nb


# ------------------------------------------------------------------------------ wrapper --
def layer_norm_first(x, scaling, bias, eps=1e-6):
    """LayerNormFirst forward: normalize over the channel dim (dim 1) of an NCHW input."""
    N, C, H, W = x.shape
    HW = H * W
    x2 = x.reshape(N, C, HW)
    itemsize = jnp.dtype(x.dtype).itemsize

    # Generation-aware VMEM budgets: v5e/v6e have 128 MiB VMEM, v7x has 64 MiB per TC.
    vmem_cap = _vmem_capacity_bytes()
    if vmem_cap >= 128 * 1024 * 1024:          # v5e / v6e
        vmem_limit = 64 * 1024 * 1024
        max_in_block = 6 * 1024 * 1024
    else:                                      # v7x (or unknown -> conservative)
        vmem_limit = min(48 * 1024 * 1024, (vmem_cap * 3) // 4)
        max_in_block = 3 * 1024 * 1024

    T, Nb = _choose_tiles(N, C, HW, itemsize, vmem_limit, max_in_block)
    grid = (N // Nb, pl.cdiv(HW, T))           # ragged spatial edge handled by Pallas masking

    # Lane-dense f32 scale/bias blocks; constant index_map -> loaded once, no lane splat.
    scale3 = jnp.broadcast_to(scaling.astype(jnp.float32).reshape(1, C, 1), (1, C, T))
    bias3 = jnp.broadcast_to(bias.astype(jnp.float32).reshape(1, C, 1), (1, C, T))

    out = pl.pallas_call(
        _make_layernorm_first_kernel(float(eps)),
        out_shape=jax.ShapeDtypeStruct((N, C, HW), x.dtype),
        grid_spec=pltpu.PrefetchScalarGridSpec(
            num_scalar_prefetch=0,
            grid=grid,
            in_specs=[
                pl.BlockSpec((Nb, C, T), lambda n, t: (n, 0, t)),
                pl.BlockSpec((1, C, T), lambda n, t: (0, 0, 0)),
                pl.BlockSpec((1, C, T), lambda n, t: (0, 0, 0)),
            ],
            out_specs=pl.BlockSpec((Nb, C, T), lambda n, t: (n, 0, t)),
        ),
        compiler_params=pltpu.CompilerParams(
            dimension_semantics=("parallel", "parallel"),
            vmem_limit_bytes=vmem_limit,
        ),
    )(x2, scale3, bias3)

    return out.reshape(N, C, H, W)


# ---------------------------------------------------------------------------- reference --
def layer_norm_first_ref(x, scaling, bias, eps=1e-6):
    mu = jnp.mean(x, axis=1, keepdims=True)
    var = jnp.mean((x - mu) ** 2, axis=1, keepdims=True)
    x_n = (x - mu) / jnp.sqrt(var + eps)
    return scaling[None, :, None, None] * x_n + bias[None, :, None, None]


if __name__ == "__main__":
    key = jax.random.PRNGKey(0)
    kx, ks, kb = jax.random.split(key, 3)

    N, C, H, W = 2, 4, 16, 16
    x = jax.random.normal(kx, (N, C, H, W), dtype=jnp.float32)

    # nn.Parameter shapes from __init__: scaling=(C,) (init ones), bias=(C,) (init zeros).
    # Use deterministic non-trivial values to exercise the affine path.
    scaling = 1.0 + 0.1 * jax.random.normal(ks, (C,), dtype=jnp.float32)
    bias = 0.1 * jax.random.normal(kb, (C,), dtype=jnp.float32)

    out = layer_norm_first(x, scaling, bias)
    out = jax.block_until_ready(out)

    ref = layer_norm_first_ref(x, scaling, bias)
    assert out.shape == (N, C, H, W)
    assert jnp.allclose(out, ref, atol=1e-5, rtol=1e-5), "mismatch vs reference"
    print("KERNEL_OK")
</pallas_src>

<mosaic_0001>
module attributes {stable_mosaic.version = 11 : i64} {
  func.func @kernel(%arg0: i32, %arg1: i32, %arg2: memref<1x4x256xf32, #tpu.memory_space<vmem>>, %arg3: memref<1x4x256xf32, #tpu.memory_space<vmem>>, %arg4: memref<1x4x256xf32, #tpu.memory_space<vmem>>, %arg5: memref<1x4x256xf32, #tpu.memory_space<vmem>>) attributes {dimension_semantics = [#tpu.dimension_semantics<parallel>, #tpu.dimension_semantics<parallel>], iteration_bounds = array<i64: 2, 1>, scalar_prefetch = 0 : i64, scratch_operands = 0 : i64, tpu.core_type = #tpu.core_type<tc>, window_params = [{transform_indices = @transform_0, window_bounds = array<i64: 1, 4, 256>}, {pipeline_mode = #tpu.pipeline_mode<synchronous>, transform_indices = @transform_1, window_bounds = array<i64: 1, 4, 256>}, {pipeline_mode = #tpu.pipeline_mode<synchronous>, transform_indices = @transform_2, window_bounds = array<i64: 1, 4, 256>}, {transform_indices = @transform_3, window_bounds = array<i64: 1, 4, 256>}]} {
    %c0 = arith.constant 0 : index
    %c0_0 = arith.constant 0 : index
    %c0_1 = arith.constant 0 : index
    %0 = vector.load %arg2[%c0, %c0_0, %c0_1] : memref<1x4x256xf32, #tpu.memory_space<vmem>>, vector<1x4x256xf32>
    %cst = arith.constant dense<0.000000e+00> : vector<1x256xf32>
    %1 = vector.multi_reduction <add>, %0, %cst [1] : vector<1x4x256xf32> to vector<1x256xf32>
    %2 = vector.shape_cast %1 : vector<1x256xf32> to vector<1x1x256xf32>
    %cst_2 = arith.constant 4.000000e+00 : f32
    %3 = vector.broadcast %cst_2 : f32 to vector<1x1x256xf32>
    %4 = arith.divf %2, %3 : vector<1x1x256xf32>
    %5 = vector.broadcast %4 : vector<1x1x256xf32> to vector<1x4x256xf32>
    %6 = arith.subf %0, %5 : vector<1x4x256xf32>
    %7 = arith.mulf %6, %6 : vector<1x4x256xf32>
    %cst_3 = arith.constant dense<0.000000e+00> : vector<1x256xf32>
    %8 = vector.multi_reduction <add>, %7, %cst_3 [1] : vector<1x4x256xf32> to vector<1x256xf32>
    %9 = vector.shape_cast %8 : vector<1x256xf32> to vector<1x1x256xf32>
    %cst_4 = arith.constant 4.000000e+00 : f32
    %10 = vector.broadcast %cst_4 : f32 to vector<1x1x256xf32>
    %11 = arith.divf %9, %10 : vector<1x1x256xf32>
    %cst_5 = arith.constant 9.99999997E-7 : f32
    %12 = vector.broadcast %cst_5 : f32 to vector<1x1x256xf32>
    %13 = arith.addf %11, %12 : vector<1x1x256xf32>
    %14 = math.rsqrt %13 : vector<1x1x256xf32>
    %c0_6 = arith.constant 0 : index
    %c0_7 = arith.constant 0 : index
    %c0_8 = arith.constant 0 : index
    %15 = vector.load %arg3[%c0_6, %c0_7, %c0_8] : memref<1x4x256xf32, #tpu.memory_space<vmem>>, vector<1x4x256xf32>
    %16 = vector.broadcast %14 : vector<1x1x256xf32> to vector<1x4x256xf32>
    %17 = arith.mulf %6, %16 : vector<1x4x256xf32>
    %18 = arith.mulf %15, %17 : vector<1x4x256xf32>
    %c0_9 = arith.constant 0 : index
    %c0_10 = arith.constant 0 : index
    %c0_11 = arith.constant 0 : index
    %19 = vector.load %arg4[%c0_9, %c0_10, %c0_11] : memref<1x4x256xf32, #tpu.memory_space<vmem>>, vector<1x4x256xf32>
    %20 = arith.addf %18, %19 : vector<1x4x256xf32>
    %c0_12 = arith.constant 0 : index
    %c0_13 = arith.constant 0 : index
    %c0_14 = arith.constant 0 : index
    %21 = vector.load %arg5[%c0_12, %c0_13, %c0_14] : memref<1x4x256xf32, #tpu.memory_space<vmem>>, vector<1x4x256xf32>
    tpu.vector_store %arg5[%c0_12, %c0_13, %c0_14], %20 {strides = array<i32>} : memref<1x4x256xf32, #tpu.memory_space<vmem>>, vector<1x4x256xf32>,
    return
  }
  func.func @transform_0(%arg0: i32, %arg1: i32) -> (i32, i32, i32) {
    %c0_i32 = arith.constant 0 : i32
    %c0_i32_0 = arith.constant 0 : i32
    return %arg0, %c0_i32, %arg1 : i32, i32, i32
  }
  func.func @transform_1(%arg0: i32, %arg1: i32) -> (i32, i32, i32) {
    %c0_i32 = arith.constant 0 : i32
    %c0_i32_0 = arith.constant 0 : i32
    %c0_i32_1 = arith.constant 0 : i32
    %c0_i32_2 = arith.constant 0 : i32
    return %c0_i32, %c0_i32_0, %c0_i32_1 : i32, i32, i32
  }
  func.func @transform_2(%arg0: i32, %arg1: i32) -> (i32, i32, i32) {
    %c0_i32 = arith.constant 0 : i32
    %c0_i32_0 = arith.constant 0 : i32
    %c0_i32_1 = arith.constant 0 : i32
    %c0_i32_2 = arith.constant 0 : i32
    return %c0_i32, %c0_i32_0, %c0_i32_1 : i32, i32, i32
  }
  func.func @transform_3(%arg0: i32, %arg1: i32) -> (i32, i32, i32) {
    %c0_i32 = arith.constant 0 : i32
    %c0_i32_0 = arith.constant 0 : i32
    return %arg0, %c0_i32, %arg1 : i32, i32, i32
  }
}

</mosaic_0001>

<bundles_post_ra>
// kernel: tpu_custom_call.1
= control target key start
LH: loop header
LB: loop body
LE: loop exit
PB: predicated region body
PF: predicated region fallthrough
CT: control target
= control target key end

     0   :  { %8 = vsyncpa [#allocation3], 0  ;;  %s971_s0 = inlined_call_operand.hbm [shape: f32[2,4,256], index: 0, kind: input, shape index: {}]   ;;  %s972_s1 = inlined_call_operand.hbm [shape: f32[1,4,256], index: 1, kind: input, shape index: {}]   ;;  %s973_s2 = inlined_call_operand.hbm [shape: f32[1,4,256], index: 2, kind: input, shape index: {}]   ;;  %s974_s3 = inlined_call_operand.hbm [shape: f32[2,4,256], index: 3, kind: output, shape index: {}]  }
   0x1   :  { %10 = vsyncpa [#allocation3 + $0x1], 0 }
   0x2   :  { %11 = vsyncpa [#allocation6], 0 }
   0x3   :  { %12 = vsyncpa [#allocation4], 0 }
   0x4   :  { %14 = vsyncpa [#allocation4 + $0x1], 0  ;;  %s720_s12 = smov 0   ;;  %s722_s13 = smov 0  }
   0x5   :  { %s724_s14 = smov 0   ;;  %s726_s15 = smov 0  }
   0x6   :  { %s728_s16 = smov 0   ;;  %s730_s17 = smov 0  }
   0x7 LB: > { %s413_s18 = sadd.s32 4294967295, %s694_s17   ;;  %s414_s19 = sadd.s32 4294967294, %s694_s17   ;;  %s694_s17 = sphi %s730_s17, %s20_s17   ;;  %s690_s16 = sphi %s728_s16, %s997_s16   ;;  %s686_s15 = sphi %s726_s15, %s996_s15   ;;  %s682_s14 = sphi %s724_s14, %s995_s14   ;;  %s678_s13 = sphi %s722_s13, %s994_s13   ;;  %s674_s12 = sphi %s720_s12, %s993_s12  }
   0x8   : > { %p54_p0 = scmp.ne.s32.totalorder %s678_s13, %s674_s12  ;;  %p754_p1 = scmp.eq.s32.totalorder %s413_s18, 0 }
   0x9   : > { %p758_p2 = scmp.eq.s32.totalorder %s413_s18, 1  ;;  %p128_p3 = scmp.eq.s32.totalorder %s414_s19, 1 }
   0xa   : > { %s979_s20 = scalar_select %p754_p1, 1, 0 }
   0xb   : > { %s980_s21 = scalar_select %p758_p2, 1, 0 }
   0xc   : > { %p764_p4 = por %p754_p1, %p54_p0  ;;  %p415_p5 = scmp.ge.s32.totalorder %s694_s17, 1 }
   0xd   : > { %p769_p6 = por %p128_p3, %p54_p0  ;;  %p135_p7 = scmp.lt.s32.totalorder %s694_s17, 3 }
   0xe   : > { %s981_s22 = scalar_select %p764_p4, 1, 0 }
   0xf   : > { %s982_s23 = scalar_select %p769_p6, 1, 0 }
  0x10   : > { %p774_p8 = pnand %p415_p5, %p135_p7  ;;  %s696_s25 = smov [#allocation5]  }
  0x11   : > { %s148_s26 = sshll.u32 %s696_s25, 4  ;;  %s697_s27 = smov [#allocation7]   ;;  %s149_s26 = int_to_ptr.vmem [resolvable:$true] %s148_s26 }
  0x12   : > { %s983_s24 = scalar_select %p774_p8, 1, 0 }
  0x13   : > { %p446_p10 = pneg %p774_p8  ;;  %s159_s28 = sshll.u32 %s697_s27, 4  ;;  %s787_s28 = int_to_ptr.vmem [resolvable:$true] %s159_s28 }
  0x14   : > { %s522_s5 = scalar_lea.hbm %s972_s1, 128 }
  0x15   : > { %p783_p11 = pnand %p446_p10, %p754_p1  ;;  %p523_p12 = scmp.ne.s32.totalorder %s972_s1, %s522_s5 }
  0x16   : > { %p529_p5 = scmp.lt.u32.totalorder %s522_s5, %s972_s1 }
  0x17   : > { %p524_p13 = pneg %p783_p11 }
  0x19   : > { %p525_p0 = pnand %p524_p13, %p523_p12 }
  0x1b   : > { %p526_p3 = pneg %p525_p0 }
  0x1d   : > { %p531_p7 = pnand %p529_p5, %p526_p3 }
  0x1f   : > { %534 = shalt.err (!%p531_p7)
}
  0x20   : > { %s535_s10 = scalar_lea.vmem %s149_s26, 128  ;;  %p543_p1 = scmp.lt.s32.totalorder %s149_s26, %s149_s26 }
  0x21   : > { %p536_p10 = scmp.ne.s32.totalorder %s149_s26, %s535_s10  ;;  %p544_p4 = scmp.lt.s32.totalorder %s535_s10, %s535_s10 }
  0x23   : > { %p538_p9 = pnand %p536_p10, %p524_p13  ;;  %p545_p8 = por %p544_p4, %p543_p1 }
  0x25   : > { %p539_p6 = pneg %p538_p9 }
  0x27   : > { %p546_p2 = pnand %p545_p8, %p539_p6 }
  0x29   : > { %549 = shalt.err (!%p546_p2)
}
  0x2a   : > { %449 = dma.hbm_to_vmem [thread:$0]  (!%p783_p11), %s972_s1, 128, %s149_s26, [#allocation6]  }
  0x2b   : > { %s550_s27 = scalar_lea.hbm %s973_s2, 128 }
  0x2c   : > { %p551_p9 = scmp.ne.s32.totalorder %s973_s2, %s550_s27  ;;  %p557_p2 = scmp.lt.u32.totalorder %s550_s27, %s973_s2 }
  0x2e   : > { %p553_p1 = pnand %p551_p9, %p524_p13 }
  0x30   : > { %p554_p4 = pneg %p553_p1 }
  0x32   : > { %p559_p6 = pnand %p557_p2, %p554_p4 }
  0x34   : > { %562 = shalt.err (!%p559_p6)
}
  0x35   : > { %s563_s26 = scalar_lea.vmem %s787_s28, 128  ;;  %p571_p3 = scmp.lt.s32.totalorder %s787_s28, %s787_s28 }
  0x36   : > { %p564_p8 = scmp.ne.s32.totalorder %s787_s28, %s563_s26  ;;  %p572_p5 = scmp.lt.s32.totalorder %s563_s26, %s563_s26 }
  0x38   : > { %p566_p12 = pnand %p564_p8, %p524_p13  ;;  %p573_p7 = por %p572_p5, %p571_p3 }
  0x3a   : > { %p567_p0 = pneg %p566_p12 }
  0x3c   : > { %p574_p10 = pnand %p573_p7, %p567_p0 }
  0x3e   : > { %577 = shalt.err (!%p574_p10)
}
  0x3f   : > { %452 = dma.hbm_to_vmem [thread:$0]  (!%p783_p11), %s973_s2, 128, %s787_s28, [#allocation6]  }
  0x40   : > { %s32_s9 = sadd.s32 1, %s690_s16  ;;  %s41_s10 = sadd.s32 1, %s682_s14 }
  0x41   : > { %p34_p13 = scmp.ge.s32.totalorder %s32_s9, 2  ;;  %p48_p9 = scmp.ne.s32.totalorder %s682_s14, %s678_s13 }
  0x42   : > { %p49_p1 = scmp.eq.s32.totalorder %s694_s17, 0  ;;  %p463_p4 = scmp.lt.s32.totalorder %s694_s17, 2 }
  0x43   : > { %s999_s9 = smov (%p34_p13, %s32_s9), 0  ;;  %p985_p6 = scmp.ne.s32.totalorder %s980_s21, 0 }
  0x44   : > { %p50_p2 = por %p49_p1, %p48_p9  ;;  %s36_s11 = ssub.s32 %s690_s16, %s999_s9 }
  0x45   : > { %p846_p8 = por %p985_p6, %p48_p9  ;;  %s170_s18 = sand.u32 1, %s682_s14  }
  0x46   : > { %p39_p12 = scmp.eq.s32.totalorder %s36_s11, 0  ;;  %s419_s28 = sshll.u32 %s170_s18, 3 }
  0x47   : > { %s432_s19 = sshll.u32 %s690_s16, 7  ;;  %s174_s21 = scalar_lea.vmem [#allocation2], %s419_s28 }
  0x48   : > { %s855_s25 = scalar_select %p39_p12, %s682_s14, %s41_s10  }
  0x49   : > { %s860_s4 = scalar_lea.hbm %s971_s0, %s432_s19  ;;  %s184_s5 = sshll.u32 %s174_s21, 4  ;;  %s868_s5 = int_to_ptr.vmem [resolvable:$true] %s184_s5 }
  0x4a   : > { %p864_p11 = pnand %p463_p4, %p50_p2  ;;  %s171_s26 = scalar_lea.sflag [#allocation3], %s170_s18 }
  0x4b   : > { %s578_s7 = scalar_lea.hbm %s860_s4, 128  ;;  %s583_s11 = scalar_lea.hbm %s971_s0, 256 }
  0x4c   : > { %p579_p0 = scmp.ne.s32.totalorder %s860_s4, %s578_s7  ;;  %p580_p3 = pneg %p864_p11 }
  0x4d   : > { %p584_p10 = scmp.lt.u32.totalorder %s860_s4, %s971_s0  ;;  %p585_p13 = scmp.lt.u32.totalorder %s583_s11, %s578_s7 }
  0x4e   : > { %p581_p5 = pnand %p580_p3, %p579_p0  ;;  %p587_p1 = scmp.lt.u32.totalorder %s578_s7, %s860_s4 }
  0x4f   : > { %p586_p9 = por %p585_p13, %p584_p10 }
  0x50   : > { %p582_p7 = pneg %p581_p5 }
  0x51   : > { %p588_p4 = por %p587_p1, %p586_p9 }
  0x53   : > { %p589_p2 = pnand %p588_p4, %p582_p7 }
  0x55   : > { %592 = shalt.err (!%p589_p2)
}
  0x56   : > { %s593_s18 = scalar_lea.vmem %s868_s5, 128  ;;  %s698_s27 = smov [#allocation2]  }
  0x57   : > { %p594_p6 = scmp.ne.s32.totalorder %s868_s5, %s593_s18  ;;  %s598_s30 = sshll.u32 %s698_s27, 4  ;;  %s599_s30 = int_to_ptr.vmem [resolvable:$false] %s598_s30 }
  0x58   : > { %s600_s21 = scalar_lea.vmem %s599_s30, 256  ;;  %p601_p5 = scmp.lt.s32.totalorder %s868_s5, %s599_s30 }
  0x59   : > { %p596_p12 = pnand %p594_p6, %p580_p3  ;;  %p602_p10 = scmp.lt.s32.totalorder %s600_s21, %s593_s18 }
  0x5b   : > { %p597_p0 = pneg %p596_p12  ;;  %p603_p13 = por %p602_p10, %p601_p5 }
  0x5d   : > { %p604_p9 = pnand %p603_p13, %p597_p0 }
  0x5f   : > { %607 = shalt.err (!%p604_p9)
}
  0x60   : > { %456 = dma.hbm_to_vmem [thread:$0]  (!%p864_p11), %s860_s4, 128, %s868_s5, %s171_s26  }
  0x61   : > { %p988_p7 = scmp.ne.s32.totalorder %s983_s24, 0 }
  0x62   : > { %s898_s7 = sand.u32 (!%p988_p7), 1, %s678_s13   ;;  %p989_p3 = scmp.ne.s32.totalorder (!%p988_p7), %s981_s22, 0 }
  0x63   : > { %193 = sbr.rel (%p988_p7) target bundleno = 186 (0xba), region = 32  ;;  %s423_s8 = sshll.u32 (!%p988_p7), %s898_s7, 3 }
  0x64   : > { %s196_s10 = scalar_lea.sflag (!%p988_p7), [#allocation3], %s898_s7  ;;  %s199_s11 = scalar_lea.vmem (!%p988_p7), [#allocation2], %s423_s8 }
  0x6a   : > { %661 = dma.done.wait (%p989_p3), %s196_s10, 128  }
  0x6b   : > { %663 = vsyncadd (%p989_p3), %s196_s10, 4294967168  ;;  %p990_p11 = scmp.ne.s32.totalorder %s979_s20, 0 }
  0x6d   : > { %665 = dma.done.wait (%p990_p11), [#allocation6], 256  }
  0x6e   : > { %667 = vsyncadd (%p990_p11), [#allocation6], 4294967040  ;;  %vm236_vm0 = vcmask 1043456   ;;  %v232_v0 = vld [vmem:[%s199_s11] sm:$0xff]  ;;  %v283_v43 = vld [vmem:[#allocation5] sm:$0xff]  ;;  %s229_s20 = scalar_lea.vmem [#allocation8], %s423_s8 }
  0x6f   : > { %v234_v1 = vcombine.high %v232_v0, %v232_v0  ;;  %v237_v2 = vsel %vm236_vm0, %v232_v0, 0.0  ;;  %v290_v45 = vld [vmem:[#allocation7] sm:$0xff]  ;;  %s310_s22 = sshll.u32 %s229_s20, 4  ;;  %s433_s24 = sshll.u32 %s686_s15, 7  ;;  %s919_s22 = int_to_ptr.vmem [resolvable:$true] %s310_s22 }
  0x70   : > { %v238_v3 = vrot.slane %v237_v2, 4  ;;  %s924_s6 = scalar_lea.hbm %s974_s3, %s433_s24  ;;  %s294_s26 = scalar_lea.sflag [#allocation4], %s898_s7 }
  0x71   : > { %v244_v4 = vsel %vm236_vm0, %v234_v1, 0.0  ;;  %s608_s28 = scalar_lea.vmem %s919_s22, 128  ;;  %s699_s15 = smov [#allocation8]  }
  0x72   : > { %v239_v5 = vadd.f32 %v238_v3, %v237_v2  ;;  %v245_v6 = vrot.slane %v244_v4, 4  ;;  %p609_p1 = scmp.ne.s32.totalorder %s919_s22, %s608_s28  ;;  %s612_s19 = sshll.u32 %s699_s15, 4  ;;  %s613_s19 = int_to_ptr.vmem [resolvable:$false] %s612_s19 }
  0x73   : > { %s614_s18 = scalar_lea.vmem %s613_s19, 256  ;;  %p615_p6 = scmp.lt.s32.totalorder %s919_s22, %s613_s19 }
  0x74   : > { %v240_v7 = vrot.slane %v239_v5, 2  ;;  %v246_v8 = vadd.f32 %v245_v6, %v244_v4  ;;  %p610_p4 = pnand %p609_p1, %p846_p8  ;;  %p616_p12 = scmp.lt.s32.totalorder %s614_s18, %s608_s28 }
  0x76   : > { %v241_v9 = vadd.f32 %v240_v7, %v239_v5  ;;  %v247_v10 = vrot.slane %v246_v8, 2  ;;  %p611_p2 = pneg %p610_p4  ;;  %p617_p0 = por %p616_p12, %p615_p6 }
  0x78   : > { %v242_v11 = vrot.slane %v241_v9, 1  ;;  %v248_v12 = vadd.f32 %v247_v10, %v246_v8  ;;  %p618_p5 = pnand %p617_p0, %p611_p2 }
  0x7a   : > { %v243_v13 = vadd.f32 %v242_v11, %v241_v9  ;;  %v249_v14 = vrot.slane %v248_v12, 1 }
  0x7c   : > { %v250_v15 = vadd.f32 %v249_v14, %v248_v12  ;;  %v252_v16 = vmul.f32 0.25, %v243_v13 }
  0x7e   : > { %v253_v17 = vmul.f32 0.25, %v250_v15 }
  0x80   : > { %v256_v18 = vcombine.low %v252_v16, %v253_v17 }
  0x82   : > { %v258_v19 = vsub.f32 %v232_v0, %v256_v18 }
  0x84   : > { %v259_v20 = vmul.f32 %v258_v19, %v258_v19 }
  0x86   : > { %v261_v21 = vcombine.high %v259_v20, %v259_v20  ;;  %v263_v22 = vsel %vm236_vm0, %v259_v20, 0.0 }
  0x87   : > { %v264_v23 = vrot.slane %v263_v22, 4 }
  0x88   : > { %v270_v24 = vsel %vm236_vm0, %v261_v21, 0.0 }
  0x89   : > { %v265_v25 = vadd.f32 %v264_v23, %v263_v22  ;;  %v271_v26 = vrot.slane %v270_v24, 4 }
  0x8b   : > { %v266_v27 = vrot.slane %v265_v25, 2  ;;  %v272_v28 = vadd.f32 %v271_v26, %v270_v24 }
  0x8d   : > { %v267_v29 = vadd.f32 %v266_v27, %v265_v25  ;;  %v273_v30 = vrot.slane %v272_v28, 2 }
  0x8f   : > { %v268_v31 = vrot.slane %v267_v29, 1  ;;  %v274_v32 = vadd.f32 %v273_v30, %v272_v28 }
  0x91   : > { %v269_v33 = vadd.f32 %v268_v31, %v267_v29  ;;  %v275_v34 = vrot.slane %v274_v32, 1 }
  0x93   : > { %v276_v35 = vadd.f32 %v275_v34, %v274_v32  ;;  %v277_v36 = vmul.f32 0.25, %v269_v33 }
  0x95   : > { %v278_v37 = vmul.f32 0.25, %v276_v35  ;;  %v279_v38 = vadd.f32 1e-06, %v277_v36 }
  0x97   : > { %v280_v39 = vadd.f32 1e-06, %v278_v37  ;;  %518 = vrsqrt.f32 %v279_v38 }
  0x99   : > { %520 = vrsqrt.f32 %v280_v39 }
  0xa1   : > { %v519_v40 = vpop.eup %518 }
  0xa3   : > { %v521_v41 = vpop.eup %520 }
  0xa4   : > { %v286_v42 = vcombine.low %v519_v40, %v521_v41 }
  0xa6   : > { %v288_v44 = vmul.f32 %v286_v42, %v258_v19 }
  0xa8   : > { %v289_v46 = vmul.f32 %v288_v44, %v283_v43 }
  0xaa   : > { %v291_v47 = vadd.f32 %v290_v45, %v289_v46 }
  0xac   : > { %292 = vst [vmem:[%s229_s20] sm:$0xff] %v291_v47 }
  0xad   : > { %621 = shalt.err (!%p618_p5)
}
  0xae   : > { %s622_s27 = scalar_lea.hbm %s924_s6, 128  ;;  %s626_s7 = scalar_lea.hbm %s974_s3, 256 }
  0xaf   : > { %p623_p10 = scmp.ne.s32.totalorder %s924_s6, %s622_s27  ;;  %p627_p7 = scmp.lt.u32.totalorder %s924_s6, %s974_s3 }
  0xb0   : > { %p628_p3 = scmp.lt.u32.totalorder %s626_s7, %s622_s27  ;;  %p630_p1 = scmp.lt.u32.totalorder %s622_s27, %s924_s6 }
  0xb1   : > { %p624_p13 = pnand %p623_p10, %p846_p8 }
  0xb2   : > { %p629_p11 = por %p628_p3, %p627_p7 }
  0xb3   : > { %p625_p9 = pneg %p624_p13 }
  0xb4   : > { %p631_p4 = por %p630_p1, %p629_p11 }
  0xb6   : > { %p632_p2 = pnand %p631_p4, %p625_p9 }
  0xb8   : > { %635 = shalt.err (!%p632_p2)
}
  0xb9   : > { %444 = dma.vmem_to_hbm [thread:$0]  (%p846_p8), %s919_s22, 128, %s924_s6, %s294_s26  }
  0xba PF: > { %s322_s11 = sand.u32 1, %s674_s12   ;;  %p991_p6 = scmp.ne.s32.totalorder %s982_s23, 0 }
  0xbb   : > { %p992_p12 = scmp.ge.s32.totalorder %s694_s17, 2  ;;  %s323_s20 = scalar_lea.sflag [#allocation4], %s322_s11 }
  0xbd   : > { %p458_p0 = pnand %p992_p12, %p991_p6 }
  0xbf   : > { %669 = dma.done.wait (!%p458_p0), %s323_s20, 128  }
  0xc0   : > { %671 = vsyncadd (!%p458_p0), %s323_s20, 4294967168  ;;  %s20_s17 = sadd.s32 1, %s694_s17   ;;  %s993_s12 = smov %s678_s13 }
  0xc1   : > { %p17_p5 = scmp.ge.s32.totalorder %s20_s17, 4   ;;  %s994_s13 = smov %s682_s14 }
  0xc2   : > { %s995_s14 = smov %s855_s25  ;;  %s996_s15 = smov %s690_s16 }
  0xc3   : > { %s997_s16 = smov %s999_s9  ;;  %19 = sbr.rel (!%p17_p5) target bundleno = 7 (0x7), region = 85 }
  0xca   :  { %328 = vsyncpa [#allocation3], 1 }
  0xcb   :  { %330 = vsyncpa [#allocation3 + $0x1], 1 }
  0xcc   :  { %331 = vsyncpa [#allocation6], 1 }
  0xcd   :  { %332 = vsyncpa [#allocation4], 1 }
  0xce   :  { %334 = vsyncpa [#allocation4 + $0x1], 1 }

</bundles_post_ra>
